<compile_context>
chip_gen: v5e
topology: v5e:2x2
jax: 0.10.0
libtpu: 0.0.40
codegen_flags: <defaults>
</compile_context>

<pallas_src>
import functools

import jax
import jax.numpy as jnp
from jax.experimental import pallas as pl
from jax.experimental.pallas import tpu as pltpu


def _round_up(x, m):
    return ((x + m - 1) // m) * m


# --------------------------------------------------------------------------
# Kernel 1: embedding gather (manual, overlapped DMAs) + fc1 + ReLU
# --------------------------------------------------------------------------
def _embed_fc1_kernel(batch_size, vocab_size,
                      idx_ref,      # SMEM  int32 [B]     (scalar prefetch)
                      emb_hbm,      # HBM   f32   [V, E]  (pl.ANY, manual DMA)
                      w1_ref,       # VMEM  bf16  [E, Hp]
                      b1_ref,       # VMEM  f32   [1, Hp]
                      h_ref,        # VMEM  bf16  [B, Hp]  (output)
                      embed_ref,    # VMEM  f32   [B, E]   scratch
                      dma_sem):     # DMA semaphore ()
    # Start ALL row copies first (shared semaphore), then wait B times.
    # Every copy has the same byte count, so B waits == all rows landed.
    def start_row(b, carry):
        row = jnp.clip(idx_ref[b], 0, vocab_size - 1)
        pltpu.make_async_copy(emb_hbm.at[pl.ds(row, 1), :],
                              embed_ref.at[pl.ds(b, 1), :],
                              dma_sem).start()
        return carry

    jax.lax.fori_loop(0, batch_size, start_row, 0)

    def wait_row(b, carry):
        # Dummy src of identical shape/dtype: .wait() only needs byte count.
        pltpu.make_async_copy(emb_hbm.at[pl.ds(0, 1), :],
                              embed_ref.at[pl.ds(b, 1), :],
                              dma_sem).wait()
        return carry

    jax.lax.fori_loop(0, batch_size, wait_row, 0)

    h = jnp.dot(embed_ref[...].astype(jnp.bfloat16), w1_ref[...],
                preferred_element_type=jnp.float32)
    h_ref[...] = jnp.maximum(h + b1_ref[...], 0.0).astype(h_ref.dtype)


# --------------------------------------------------------------------------
# Kernel 2: fc2 over vocab tiles (independent tiles -> "parallel" grid axis)
# --------------------------------------------------------------------------
def _fc2_kernel(h_ref,       # VMEM bf16 [B, Hp]
                w2_ref,      # VMEM bf16 [Hp, TV]
                b2_ref,      # VMEM f32  [1, TV]
                out_ref):    # VMEM      [B, TV]
    out = jnp.dot(h_ref[...], w2_ref[...], preferred_element_type=jnp.float32)
    out_ref[...] = (out + b2_ref[...]).astype(out_ref.dtype)


# --------------------------------------------------------------------------
# Wrapper
# --------------------------------------------------------------------------
def skipgram_forward(idx, emb_table, w1, b1, w2, b2, *,
                     tv=2048, logits_dtype=jnp.float32):
    """idx: int32 [B]; emb_table [V, E]; w1 [E, H]; b1 [H]/[1,H]; w2 [H, V];
    b2 [V]/[1,V].  Returns logits [B, V] in `logits_dtype` (default f32)."""
    B = idx.shape[0]
    V, E = emb_table.shape
    E2, H = w1.shape
    assert E2 == E and w2.shape == (H, V)

    Hp = _round_up(H, 128)                       # pad hidden (200 -> 256)
    tv = _round_up(max(128, min(tv, 8192)), 128)  # cap for v7x 64 MiB VMEM
    tv = min(tv, _round_up(V, 128))              # lane-dense vocab tile
    Vp = _round_up(V, tv)                        # pad vocab to a tile multiple
    n_tiles = Vp // tv

    # Zero padding preserves the math exactly; weights streamed as bf16.
    w1p = jnp.zeros((E, Hp), jnp.bfloat16).at[:, :H].set(w1.astype(jnp.bfloat16))
    b1p = jnp.zeros((1, Hp), jnp.float32).at[:, :H].set(
        b1.reshape(1, H).astype(jnp.float32))
    w2p = jnp.zeros((Hp, Vp), jnp.bfloat16).at[:H, :V].set(w2.astype(jnp.bfloat16))
    b2p = jnp.zeros((1, Vp), jnp.float32).at[:, :V].set(
        b2.reshape(1, V).astype(jnp.float32))
    embf = emb_table.astype(jnp.float32)

    # ---- stage 1: gather + fc1 + ReLU ------------------------------------
    h = pl.pallas_call(
        functools.partial(_embed_fc1_kernel, B, V),
        out_shape=jax.ShapeDtypeStruct((B, Hp), jnp.bfloat16),
        grid_spec=pltpu.PrefetchScalarGridSpec(
            num_scalar_prefetch=1,               # idx lands in SMEM
            grid=(1,),
            in_specs=[
                pl.BlockSpec(memory_space=pl.ANY),              # emb table (HBM)
                pl.BlockSpec((E, Hp), lambda i, idx: (0, 0)),   # W1
                pl.BlockSpec((1, Hp), lambda i, idx: (0, 0)),   # b1
            ],
            out_specs=pl.BlockSpec((B, Hp), lambda i, idx: (0, 0)),
            scratch_shapes=[
                pltpu.VMEM((B, E), jnp.float32),   # gathered embeddings
                pltpu.SemaphoreType.DMA(()),       # shared gather semaphore
            ],
        ),
        compiler_params=pltpu.CompilerParams(
            dimension_semantics=("arbitrary",)),
    )(idx.astype(jnp.int32), embf, w1p, b1p)

    # ---- stage 2: fc2 streamed over vocab tiles ---------------------------
    out_bytes = jnp.dtype(logits_dtype).itemsize
    # Double-buffered W2 + out + b2, plus the (revisited) h input buffers.
    vmem_est = (2 * Hp * tv * 2 + 2 * B * tv * out_bytes
                + 2 * 8 * tv * 4 + 2 * B * Hp * 2)
    vmem_limit = int(min(max(int(vmem_est * 1.5) + (4 << 20), 32 << 20),
                         48 << 20))

    cost = pl.CostEstimate(
        flops=2 * B * Hp * Vp,
        bytes_accessed=Hp * Vp * 2 + B * Hp * 2 + Vp * 4 + B * Vp * out_bytes,
        transcendentals=0,
    )

    out_p = pl.pallas_call(
        _fc2_kernel,
        out_shape=jax.ShapeDtypeStruct((B, Vp), logits_dtype),
        grid_spec=pltpu.PrefetchScalarGridSpec(
            num_scalar_prefetch=0,
            grid=(n_tiles,),
            in_specs=[
                pl.BlockSpec((B, Hp), lambda j: (0, 0)),    # h (resident)
                pl.BlockSpec((Hp, tv), lambda j: (0, j)),   # W2 vocab tile
                pl.BlockSpec((1, tv), lambda j: (0, j)),    # b2 vocab tile
            ],
            out_specs=pl.BlockSpec((B, tv), lambda j: (0, j)),
        ),
        compiler_params=pltpu.CompilerParams(
            dimension_semantics=("parallel",),   # independent tiles; uses both
            vmem_limit_bytes=vmem_limit),        # TCs on v7x
        cost_estimate=cost,
    )(h, w2p, b2p)

    return out_p[:, :V]


def skipgram_reference(idx, emb_table, w1, b1, w2, b2):
    """Pure-JAX reference with the same bf16 weight rounding as the kernel."""
    w1b = w1.astype(jnp.bfloat16).astype(jnp.float32)
    w2b = w2.astype(jnp.bfloat16).astype(jnp.float32)
    embed = jnp.take(emb_table, idx, axis=0)
    embed = embed.astype(jnp.bfloat16).astype(jnp.float32)
    h = jnp.maximum(embed @ w1b + b1.reshape(1, -1), 0.0)
    h = h.astype(jnp.bfloat16).astype(jnp.float32)
    return h @ w2b + b2.reshape(1, -1)


if __name__ == "__main__":
    # Small, layout-friendly shapes (B multiple of 8, V multiple of 128).
    vocab_size = 512
    embedding_dim = 64
    context_size = 2      # attribute of the torch module; unused in forward
    hidden = 200          # fixed by the module spec (padded to 256 internally)
    batch = 16

    key = jax.random.PRNGKey(0)
    k_emb, k_w1, k_b1, k_w2, k_b2, k_idx = jax.random.split(key, 6)

    emb_table = jax.random.normal(k_emb, (vocab_size, embedding_dim),
                                  dtype=jnp.float32)
    w1 = (jax.random.uniform(k_w1, (embedding_dim, hidden), jnp.float32,
                             -1.0, 1.0) / jnp.sqrt(embedding_dim))
    b1 = (jax.random.uniform(k_b1, (1, hidden), jnp.float32,
                             -1.0, 1.0) / jnp.sqrt(embedding_dim))
    w2 = (jax.random.uniform(k_w2, (hidden, vocab_size), jnp.float32,
                             -1.0, 1.0) / jnp.sqrt(hidden))
    b2 = (jax.random.uniform(k_b2, (1, vocab_size), jnp.float32,
                             -1.0, 1.0) / jnp.sqrt(hidden))

    idx = jax.random.randint(k_idx, (batch,), 0, vocab_size, dtype=jnp.int32)

    out = skipgram_forward(idx, emb_table, w1, b1, w2, b2)
    out = jax.block_until_ready(out)

    ref = skipgram_reference(idx, emb_table, w1, b1, w2, b2)
    assert out.shape == (batch, vocab_size)
    assert jnp.allclose(out, ref, atol=2e-2, rtol=2e-2), "mismatch vs reference"

    print("KERNEL_OK")
</pallas_src>

<mosaic_0001>
module attributes {stable_mosaic.version = 11 : i64} {
  func.func @_embed_fc1_kernel(%arg0: i32, %arg1: memref<16xi32, #tpu.memory_space<smem>>, %arg2: memref<512x64xf32, #tpu.memory_space<any>>, %arg3: memref<64x256xbf16, #tpu.memory_space<vmem>>, %arg4: memref<1x256xf32, #tpu.memory_space<vmem>>, %arg5: memref<16x256xbf16, #tpu.memory_space<vmem>>, %arg6: memref<16x64xf32, #tpu.memory_space<vmem>>, %arg7: memref<!tpu.dma_semaphore, #tpu.memory_space<semaphore_mem>>) attributes {dimension_semantics = [#tpu.dimension_semantics<arbitrary>], iteration_bounds = array<i64: 1>, scalar_prefetch = 1 : i64, scratch_operands = 2 : i64, tpu.core_type = #tpu.core_type<tc>, window_params = [{}, {pipeline_mode = #tpu.pipeline_mode<synchronous>, transform_indices = @transform_1, window_bounds = array<i64: 64, 256>}, {pipeline_mode = #tpu.pipeline_mode<synchronous>, transform_indices = @transform_2, window_bounds = array<i64: 1, 256>}, {pipeline_mode = #tpu.pipeline_mode<synchronous>, transform_indices = @transform_3, window_bounds = array<i64: 16, 256>}]} {
    %c0_i32 = arith.constant 0 : i32
    %c16_i32 = arith.constant 16 : i32
    %0 = arith.addi %c0_i32, %c16_i32 : i32
    %c1_i32 = arith.constant 1 : i32
    scf.for %arg8 = %c0_i32 to %0 step %c1_i32  : i32 {
      %13 = arith.index_cast %arg8 : i32 to index
      %14 = memref.load %arg1[%13] : memref<16xi32, #tpu.memory_space<smem>>
      %c0_i32_13 = arith.constant 0 : i32
      %c511_i32 = arith.constant 511 : i32
      %15 = arith.maxsi %c0_i32_13, %14 : i32
      %16 = arith.minsi %c511_i32, %15 : i32
      %c0_i32_14 = arith.constant 0 : i32
      %17 = tpu.memref_slice %arg2[%16, %c0_i32_14] : memref<512x64xf32, #tpu.memory_space<any>> -> memref<1x64xf32, #tpu.memory_space<any>>
      %c0_i32_15 = arith.constant 0 : i32
      %18 = tpu.memref_slice %arg6[%arg8, %c0_i32_15] : memref<16x64xf32, #tpu.memory_space<vmem>> -> memref<1x64xf32, #tpu.memory_space<vmem>>
      tpu.enqueue_dma source(%17 : memref<1x64xf32, #tpu.memory_space<any>>) target(%18 : memref<1x64xf32, #tpu.memory_space<vmem>>) target_semaphore(%arg7 : memref<!tpu.dma_semaphore, #tpu.memory_space<semaphore_mem>>)
    }
    %c16_i32_0 = arith.constant 16 : i32
    %c0_i32_1 = arith.constant 0 : i32
    %c16_i32_2 = arith.constant 16 : i32
    %1 = arith.addi %c0_i32_1, %c16_i32_2 : i32
    %c1_i32_3 = arith.constant 1 : i32
    scf.for %arg8 = %c0_i32_1 to %1 step %c1_i32_3  : i32 {
      %c0_i32_13 = arith.constant 0 : i32
      %c0_i32_14 = arith.constant 0 : i32
      %13 = tpu.memref_slice %arg2[%c0_i32_13, %c0_i32_14] : memref<512x64xf32, #tpu.memory_space<any>> -> memref<1x64xf32, #tpu.memory_space<any>>
      %c0_i32_15 = arith.constant 0 : i32
      %14 = tpu.memref_slice %arg6[%arg8, %c0_i32_15] : memref<16x64xf32, #tpu.memory_space<vmem>> -> memref<1x64xf32, #tpu.memory_space<vmem>>
      tpu.wait_dma2 semaphore(%arg7 : memref<!tpu.dma_semaphore, #tpu.memory_space<semaphore_mem>>) src(%13 : memref<1x64xf32, #tpu.memory_space<any>>) dst(%14 : memref<1x64xf32, #tpu.memory_space<vmem>>)
    }
    %c16_i32_4 = arith.constant 16 : i32
    %c0 = arith.constant 0 : index
    %c0_5 = arith.constant 0 : index
    %2 = vector.load %arg6[%c0, %c0_5] : memref<16x64xf32, #tpu.memory_space<vmem>>, vector<16x64xf32>
    %3 = arith.truncf %2 : vector<16x64xf32> to vector<16x64xbf16>
    %c0_6 = arith.constant 0 : index
    %c0_7 = arith.constant 0 : index
    %4 = vector.load %arg3[%c0_6, %c0_7] : memref<64x256xbf16, #tpu.memory_space<vmem>>, vector<64x256xbf16>
    %cst = arith.constant dense<0.000000e+00> : vector<16x256xf32>
    %5 = tpu.matmul %3, %4, %cst {dimension_numbers = #tpu.dot_dimension_numbers<[1], [0], [0], [1], [0, 0, 1, 1], [], []>} : vector<16x64xbf16>, vector<64x256xbf16>, vector<16x256xf32> -> vector<16x256xf32>
    %c0_8 = arith.constant 0 : index
    %c0_9 = arith.constant 0 : index
    %6 = vector.load %arg4[%c0_8, %c0_9] : memref<1x256xf32, #tpu.memory_space<vmem>>, vector<1x256xf32>
    %7 = vector.broadcast %6 : vector<1x256xf32> to vector<16x256xf32>
    %8 = arith.addf %5, %7 : vector<16x256xf32>
    %cst_10 = arith.constant 0.000000e+00 : f32
    %9 = vector.broadcast %cst_10 : f32 to vector<16x256xf32>
    %10 = arith.maximumf %8, %9 : vector<16x256xf32>
    %11 = arith.truncf %10 : vector<16x256xf32> to vector<16x256xbf16>
    %c0_11 = arith.constant 0 : index
    %c0_12 = arith.constant 0 : index
    %12 = vector.load %arg5[%c0_11, %c0_12] : memref<16x256xbf16, #tpu.memory_space<vmem>>, vector<16x256xbf16>
    tpu.vector_store %arg5[%c0_11, %c0_12], %11 {strides = array<i32>} : memref<16x256xbf16, #tpu.memory_space<vmem>>, vector<16x256xbf16>,
    return
  }
  func.func @transform_1(%arg0: i32, %arg1: memref<16xi32, #tpu.memory_space<smem>>) -> (i32, i32) {
    %c0_i32 = arith.constant 0 : i32
    %c0_i32_0 = arith.constant 0 : i32
    %c0_i32_1 = arith.constant 0 : i32
    return %c0_i32, %c0_i32_0 : i32, i32
  }
  func.func @transform_2(%arg0: i32, %arg1: memref<16xi32, #tpu.memory_space<smem>>) -> (i32, i32) {
    %c0_i32 = arith.constant 0 : i32
    %c0_i32_0 = arith.constant 0 : i32
    %c0_i32_1 = arith.constant 0 : i32
    return %c0_i32, %c0_i32_0 : i32, i32
  }
  func.func @transform_3(%arg0: i32, %arg1: memref<16xi32, #tpu.memory_space<smem>>) -> (i32, i32) {
    %c0_i32 = arith.constant 0 : i32
    %c0_i32_0 = arith.constant 0 : i32
    %c0_i32_1 = arith.constant 0 : i32
    return %c0_i32, %c0_i32_0 : i32, i32
  }
}

</mosaic_0001>

<bundles_post_ra>
// kernel: tpu_custom_call.1
= control target key start
LH: loop header
LB: loop body
LE: loop exit
PB: predicated region body
PF: predicated region fallthrough
CT: control target
= control target key end

     0   :  { %s344_s18 = smov [#allocation5]   ;;  %s433_s0 = inlined_call_operand.vmem [shape: s32[16], index: 0, kind: input, shape index: {}]   ;;  %s434_s1 = inlined_call_operand.vmem [shape: f32[512,64], index: 1, kind: input, shape index: {}]   ;;  %s435_s2 = inlined_call_operand.vmem [shape: bf16[64,256], index: 2, kind: input, shape index: {}]   ;;  %s436_s3 = inlined_call_operand.vmem [shape: f32[1,256], index: 3, kind: input, shape index: {}]   ;;  %s437_s4 = inlined_call_operand.hbm [shape: bf16[16,256], index: 4, kind: output, shape index: {}]  }
   0x1   :  { %s10_s17 = sshll.u32 %s433_s0, 4  ;;  %s11_s17 = int_to_ptr.vmem [resolvable:$true] %s10_s17 }
   0x2   :  { %13 = dma.vmem_to_smem %s11_s17, 16, %s344_s18, [#allocation4] }
   0x3   :  { %330 = dma.done.wait [#allocation4], 16 }
   0x4   :  { %331 = vsyncadd [#allocation4], 4294967280 }
   0x5   :  { %16 = sfence }
   0x6   :  { %17 = vsyncpa [#allocation7], 0  ;;  %s336_s19 = smov 0  }
   0x7 LB: > { %s29_s20 = sld [smem:[#allocation5 + %s338_s19]]  ;;  %s35_s23 = scalar_lea.vmem [#allocation2], %s338_s19  ;;  %s338_s19 = sphi %s336_s19, %s28_s19  }
   0xd   : > { %p30_p0 = scmp.gt.s32.totalorder %s29_s20, 0  ;;  %p216_p1 = scmp.lt.s32.totalorder %s29_s20, 511 }
   0xf   : > { %s439_s20 = smov (!%p30_p0, %s29_s20), 0 }
  0x10   : > { %s441_s20 = smov (!%p216_p1, %s439_s20), 511 }
  0x11   : > { %s34_s0 = scalar_lea.vmem %s434_s1, %s441_s20 }
  0x12   : > { %v50_v0 = vld [vmem:[%s34_s0] sm:$0x1] }
  0x13   : > { %51 = vst [vmem:[%s35_s23] sm:$0x1] %v50_v0 }
  0x14   : > { %69 = vsyncadd [#allocation3], 16  ;;  %s28_s19 = sadd.s32 1, %s338_s19  }
  0x15   : > { %p25_p2 = scmp.ge.s32.totalorder %s28_s19, 16  }
  0x16   :  { %s340_s24 = smov (%p25_p2), 0  }
  0x17   :  { %27 = sbr.rel (!%p25_p2) target bundleno = 7 (0x7), region = 78 }
  0x1c LB: > { %332 = dma.done.wait [#allocation3], 16  ;;  %s342_s24 = sphi %s340_s24, %s75_s24  }
  0x1d   : > { %333 = vsyncadd [#allocation3], 4294967280  ;;  %s75_s24 = sadd.s32 1, %s342_s24  }
  0x1e   : > { %p72_p3 = scmp.ge.s32.totalorder %s75_s24, 16  }
  0x1f   :  { %v247_v1 = vld [vmem:[%s435_s2 + $0x30] sm:$0xf] (%p72_p3)  ;;  %v265_v2 = vld [vmem:[%s435_s2 + $0x34] sm:$0xf0] (%p72_p3)  ;;  %v264_v3 = vld [vmem:[%s435_s2 + $0x34] sm:$0xf] (%p72_p3) }
  0x20   :  { %74 = sbr.rel (!%p72_p3) target bundleno = 28 (0x1c), region = 89  ;;  %v248_v4 = vor.u32 (%p72_p3), %v265_v2, %v247_v1  ;;  %v249_v5 = vld [vmem:[%s435_s2 + $0x38] sm:$0xf0] (%p72_p3)  ;;  %v239_v6 = vld [vmem:[%s435_s2 + $0x20] sm:$0xf] (%p72_p3)  ;;  %v80_v25 = vld [vmem:[#allocation2 + $0x8] sm:$0xff] (%p72_p3) }
  0x21   :  { %v263_v7 = vld [vmem:[%s435_s2 + $0x24] sm:$0xf0] (%p72_p3)  ;;  %v252_v8 = vor.u32 (%p72_p3), %v264_v3, %v249_v5  ;;  %v262_v9 = vld [vmem:[%s435_s2 + $0x24] sm:$0xf] (%p72_p3)  ;;  %v241_v10 = vld [vmem:[%s435_s2 + $0x28] sm:$0xf0] (%p72_p3) }
  0x22   :  { %144 = vmatpush.bf16.msra.mxu0 (%p72_p3), %v248_v4  ;;  %v240_v11 = vor.u32 (%p72_p3), %v263_v7, %v239_v6  ;;  %v244_v12 = vor.u32 (%p72_p3), %v262_v9, %v241_v10  ;;  %v231_v13 = vld [vmem:[%s435_s2 + $0x10] sm:$0xf] (%p72_p3)  ;;  %v261_v14 = vld [vmem:[%s435_s2 + $0x14] sm:$0xf0] (%p72_p3)  ;;  %v260_v15 = vld [vmem:[%s435_s2 + $0x14] sm:$0xf] (%p72_p3) }
  0x23   :  { %158 = vmatpush.bf16.msra.mxu1 (%p72_p3), %v252_v8  ;;  %v233_v16 = vld [vmem:[%s435_s2 + $0x18] sm:$0xf0] (%p72_p3)  ;;  %v232_v17 = vor.u32 (%p72_p3), %v261_v14, %v231_v13  ;;  %v223_v19 = vld [vmem:[%s435_s2] sm:$0xf] (%p72_p3)  ;;  %v259_v20 = vld [vmem:[%s435_s2 + $0x4] sm:$0xf0] (%p72_p3) }
  0x24   :  { %v236_v18 = vor.u32 (%p72_p3), %v260_v15, %v233_v16  ;;  %v258_v21 = vld [vmem:[%s435_s2 + $0x4] sm:$0xf] (%p72_p3)  ;;  %v225_v22 = vld [vmem:[%s435_s2 + $0x8] sm:$0xf0] (%p72_p3)  ;;  %v224_v23 = vor.u32 (%p72_p3), %v259_v20, %v223_v19  ;;  %vm136_vm0 = vcmask (%p72_p3), 523264   ;;  %s345_s2 = smov (%p72_p3), [#allocation6]  }
  0x25   :  { %v79_v24 = vld [vmem:[#allocation2] sm:$0xff]  ;;  %v228_v26 = vor.u32 %v258_v21, %v225_v22  ;;  %s180_s1 = sshll.u32 %s345_s2, 4  ;;  %s346_s7 = smov 128   ;;  %s181_s1 = int_to_ptr.vmem [resolvable:$true] %s180_s1 }
  0x26   :  { %145 = vmatpush.bf16.msra.mxu0 %v240_v11  ;;  %v81_v27 = vpack.c.bf16 %v80_v25, %v79_v24  ;;  %v90_v28 = vld [vmem:[%s436_s3] sm:$0x3]  ;;  %s182_s3 = sshll.u32 %s437_s4, 4  ;;  %s347_s8 = smov 8   ;;  %s183_s3 = int_to_ptr.hbm [resolvable:$true] %s182_s3 }
  0x27   :  { %159 = vmatpush.bf16.msra.mxu1 %v244_v12  ;;  %v92_v29 = vperm.slane %v90_v28, 0  ;;  %v93_v30 = vperm.slane %v90_v28, 1 }
  0x2a   :  { %146 = vmatpush.bf16.msra.mxu0 %v232_v17 }
  0x2b   :  { %160 = vmatpush.bf16.msra.mxu1 %v236_v18 }
  0x2e   :  { %147 = vmatpush.bf16.msra.mxu0 %v224_v23 }
  0x2f   :  { %161 = vmatpush.bf16.msra.mxu1 %v228_v26 }
  0x31   :  { %253 = vmatmul.msk.bf16.vlgmr.msra.gmra.mxu0 %vm136_vm0, %v81_v27 }
  0x32   :  { %254 = vmatmul.msk.bf16.vlgmr.msra.gmra.mxu1 %vm136_vm0, %v81_v27 }
  0xae   :  { %v149_v31 = vpop.f32.mrf.mxu0 }
  0xaf   :  { %v150_v32 = vadd.f32 %v149_v31, %v92_v29  ;;  %v163_v33 = vpop.f32.mrf.mxu1 }
  0xb0   :  { %v164_v34 = vadd.f32 %v163_v33, %v93_v30 }
  0xb1   :  { %v168_v35 = vmax.f32 %v150_v32, 0.0 }
  0xb2   :  { %v169_v36 = vmax.f32 %v164_v34, 0.0 }
  0xb4   :  { %v172_v37 = vpack.c.bf16 %v169_v36, %v168_v35 }
  0xb6   :  { %174 = vst [vmem:[#allocation6] sm:$0xff] %v172_v37  ;;  %v151_v38 = vpop.f32.mrf.mxu0 }
  0xb7   :  { %v152_v39 = vadd.f32 %v151_v38, %v92_v29  ;;  %v165_v40 = vpop.f32.mrf.mxu1 }
  0xb8   :  { %v166_v41 = vadd.f32 %v165_v40, %v93_v30 }
  0xb9   :  { %v170_v42 = vmax.f32 %v152_v39, 0.0 }
  0xba   :  { %v171_v43 = vmax.f32 %v166_v41, 0.0 }
  0xbc   :  { %v173_v44 = vpack.c.bf16 %v171_v43, %v170_v42 }
  0xbe   :  { %175 = vst [vmem:[#allocation6 + $0x8] sm:$0xff] %v173_v44 }
  0xbf   :  { %188 = dma.vmem_to_hbm [thread:$0]  %s181_s1, 256, %s183_s3, [#allocation7], %s346_s7, %s346_s7, %s347_s8  }
  0xc0   :  { %334 = dma.done.wait [#allocation7], 256  }
  0xc1   :  { %335 = vsyncadd [#allocation7], 4294967040 }
  0xc2   :  { %193 = vsyncpa [#allocation7], 1 }
  0xc3   :  { %194 = vsyncmov [#allocation3] }
  0xc6   :  { %s195_s9 = vpop.sfrf %194 }
  0xc7   :  { %p255_p4 = scmp.ne.s32.totalorder %s195_s9, 0 }
  0xc9   :  { %199 = shalt.err (%p255_p4)  }

</bundles_post_ra>
